<compile_context>
chip_gen: v7x
topology: tpu7x:2x2x1
jax: 0.10.0
libtpu: 0.0.40
codegen_flags: <defaults>
</compile_context>

<pallas_src>
import jax
import jax.numpy as jnp
from jax.experimental import pallas as pl
from jax.experimental.pallas import tpu as pltpu


def _head_eval_kernel(x_ref, w_ref, b_ref, o_ref):
    """x_ref: (TB, D), w_ref: (D, P), b_ref: (1, P), o_ref: (TB, P)."""
    y = jnp.dot(x_ref[...], w_ref[...], preferred_element_type=jnp.float32)
    o_ref[...] = (y + b_ref[...].astype(jnp.float32)).astype(o_ref.dtype)


def _head_train_kernel(x_ref, m_ref, w_ref, b_ref, o_ref):
    """Same as eval, plus m_ref: (TB, D) pre-baked dropout scale (0.0 / 2.0)."""
    x = x_ref[...] * m_ref[...]  # fused mask + 1/(1-p) scale: single vmul
    y = jnp.dot(x, w_ref[...], preferred_element_type=jnp.float32)
    o_ref[...] = (y + b_ref[...].astype(jnp.float32)).astype(o_ref.dtype)


def head_forward(x, w_t, b, *, dropout_scale=None):
    """x: [B, D], w_t: [D, P] (transposed PyTorch weight), b: [P] -> [B, P].

    dropout_scale: optional [B, D] tensor of {0.0, 2.0} (training mode).
                   None => eval mode (dropout is identity).
    """
    B, D = x.shape
    D2, P = w_t.shape
    assert D == D2, (D, D2)
    b2 = b.reshape(1, P)

    # Batch tile: multiple of 8 (f32 sublane pitch), large enough to amortize
    # the ~0.35us per-grid-step overhead, small enough for v7x VMEM.
    if B >= 512 and B % 8 == 0:
        TB = 512
    else:
        TB = B  # full-extent block is always legal
    grid = (pl.cdiv(B, TB),)

    x_spec = pl.BlockSpec((TB, D), lambda i: (i, 0))
    w_spec = pl.BlockSpec((D, P), lambda i: (0, 0))   # resident across steps
    b_spec = pl.BlockSpec((1, P), lambda i: (0, 0))   # resident across steps
    o_spec = pl.BlockSpec((TB, P), lambda i: (i, 0))

    itemsize = jnp.dtype(x.dtype).itemsize
    bytes_accessed = (B * D + D * P + P + B * P) * itemsize
    if dropout_scale is not None:
        bytes_accessed += B * D * jnp.dtype(dropout_scale.dtype).itemsize
    cost = pl.CostEstimate(
        flops=2 * B * D * P, transcendentals=0, bytes_accessed=bytes_accessed
    )

    compiler_params = pltpu.CompilerParams(
        dimension_semantics=("parallel",),  # v7x: shard batch tiles across TCs
    )

    if dropout_scale is None:
        return pl.pallas_call(
            _head_eval_kernel,
            out_shape=jax.ShapeDtypeStruct((B, P), x.dtype),
            grid=grid,
            in_specs=[x_spec, w_spec, b_spec],
            out_specs=o_spec,
            compiler_params=compiler_params,
            cost_estimate=cost,
        )(x, w_t, b2)

    m_spec = pl.BlockSpec((TB, D), lambda i: (i, 0))
    return pl.pallas_call(
        _head_train_kernel,
        out_shape=jax.ShapeDtypeStruct((B, P), x.dtype),
        grid=grid,
        in_specs=[x_spec, m_spec, w_spec, b_spec],
        out_specs=o_spec,
        compiler_params=compiler_params,
        cost_estimate=cost,
    )(x, dropout_scale, w_t, b2)


if __name__ == "__main__":
    # Small shapes consistent with Head(last_dim, proj_dims)
    batch = 8
    last_dim = 32
    proj_dims = 16

    key = jax.random.PRNGKey(0)
    kx, kw, kb, kd = jax.random.split(key, 4)

    x = jax.random.normal(kx, (batch, last_dim), dtype=jnp.float32)
    # PyTorch nn.Linear parameter shapes: W [P, D], b [P]
    w = jax.random.normal(kw, (proj_dims, last_dim), dtype=jnp.float32) * (
        1.0 / jnp.sqrt(last_dim)
    )
    b = jax.random.normal(kb, (proj_dims,), dtype=jnp.float32) * 0.01
    w_t = w.T  # [D, P] for the kernel

    # ---- Eval mode: Dropout is identity, verify against plain JAX ----
    out_eval = jax.block_until_ready(head_forward(x, w_t, b))
    ref_eval = x @ w_t + b[None, :]
    assert out_eval.shape == (batch, proj_dims)
    assert jnp.allclose(out_eval, ref_eval, atol=1e-5, rtol=1e-5), "eval mismatch"

    # ---- Training mode: Bernoulli(keep=0.5) mask, inverted-dropout scale 2.0 ----
    keep = jax.random.bernoulli(kd, p=0.5, shape=x.shape)
    dropout_scale = keep.astype(x.dtype) * 2.0  # 0.0 dropped / 2.0 kept
    out_train = jax.block_until_ready(
        head_forward(x, w_t, b, dropout_scale=dropout_scale)
    )
    ref_train = (x * dropout_scale) @ w_t + b[None, :]
    assert out_train.shape == (batch, proj_dims)
    assert jnp.allclose(out_train, ref_train, atol=1e-5, rtol=1e-5), "train mismatch"

    print("KERNEL_OK")
</pallas_src>

<mosaic_0001>
module attributes {stable_mosaic.version = 11 : i64} {
  func.func @_head_eval_kernel(%arg0: i32, %arg1: memref<8x32xf32, #tpu.memory_space<vmem>>, %arg2: memref<32x16xf32, #tpu.memory_space<vmem>>, %arg3: memref<1x16xf32, #tpu.memory_space<vmem>>, %arg4: memref<8x16xf32, #tpu.memory_space<vmem>>) attributes {dimension_semantics = [#tpu.dimension_semantics<parallel>], iteration_bounds = array<i64: 1>, scalar_prefetch = 0 : i64, scratch_operands = 0 : i64, tpu.core_type = #tpu.core_type<tc>, window_params = [{transform_indices = @transform_0, window_bounds = array<i64: 8, 32>}, {pipeline_mode = #tpu.pipeline_mode<synchronous>, transform_indices = @transform_1, window_bounds = array<i64: 32, 16>}, {pipeline_mode = #tpu.pipeline_mode<synchronous>, transform_indices = @transform_2, window_bounds = array<i64: 1, 16>}, {transform_indices = @transform_3, window_bounds = array<i64: 8, 16>}]} {
    %c0 = arith.constant 0 : index
    %c0_0 = arith.constant 0 : index
    %0 = vector.load %arg1[%c0, %c0_0] : memref<8x32xf32, #tpu.memory_space<vmem>>, vector<8x32xf32>
    %c0_1 = arith.constant 0 : index
    %c0_2 = arith.constant 0 : index
    %1 = vector.load %arg2[%c0_1, %c0_2] : memref<32x16xf32, #tpu.memory_space<vmem>>, vector<32x16xf32>
    %cst = arith.constant dense<0.000000e+00> : vector<8x16xf32>
    %2 = tpu.matmul %0, %1, %cst {dimension_numbers = #tpu.dot_dimension_numbers<[1], [0], [0], [1], [0, 0, 1, 1], [], []>} : vector<8x32xf32>, vector<32x16xf32>, vector<8x16xf32> -> vector<8x16xf32>
    %c0_3 = arith.constant 0 : index
    %c0_4 = arith.constant 0 : index
    %3 = vector.load %arg3[%c0_3, %c0_4] : memref<1x16xf32, #tpu.memory_space<vmem>>, vector<1x16xf32>
    %4 = vector.broadcast %3 : vector<1x16xf32> to vector<8x16xf32>
    %5 = arith.addf %2, %4 : vector<8x16xf32>
    %c0_5 = arith.constant 0 : index
    %c0_6 = arith.constant 0 : index
    %6 = vector.load %arg4[%c0_5, %c0_6] : memref<8x16xf32, #tpu.memory_space<vmem>>, vector<8x16xf32>
    tpu.vector_store %arg4[%c0_5, %c0_6], %5 {strides = array<i32>} : memref<8x16xf32, #tpu.memory_space<vmem>>, vector<8x16xf32>,
    return
  }
  func.func @transform_0(%arg0: i32) -> (i32, i32) {
    %c0_i32 = arith.constant 0 : i32
    %c0_i32_0 = arith.constant 0 : i32
    return %arg0, %c0_i32 : i32, i32
  }
  func.func @transform_1(%arg0: i32) -> (i32, i32) {
    %c0_i32 = arith.constant 0 : i32
    %c0_i32_0 = arith.constant 0 : i32
    %c0_i32_1 = arith.constant 0 : i32
    return %c0_i32, %c0_i32_0 : i32, i32
  }
  func.func @transform_2(%arg0: i32) -> (i32, i32) {
    %c0_i32 = arith.constant 0 : i32
    %c0_i32_0 = arith.constant 0 : i32
    %c0_i32_1 = arith.constant 0 : i32
    return %c0_i32, %c0_i32_0 : i32, i32
  }
  func.func @transform_3(%arg0: i32) -> (i32, i32) {
    %c0_i32 = arith.constant 0 : i32
    %c0_i32_0 = arith.constant 0 : i32
    return %arg0, %c0_i32 : i32, i32
  }
}

</mosaic_0001>

<bundles_post_ra>
// kernel: tpu_custom_call.1
= control target key start
LH: loop header
LB: loop body
LE: loop exit
PB: predicated region body
PF: predicated region fallthrough
CT: control target
= control target key end

     0   :  { %v169_v3 = vmov 0.0|0.0   ;;  %vm170_vm0 = vmmov 0   ;;  %v171_v6 = vmov 0.0   ;;  %s223_s0 = inlined_call_operand.vmem [shape: f32[8,32], index: 0, kind: input, shape index: {}]   ;;  %s224_s1 = inlined_call_operand.vmem [shape: f32[32,16], index: 1, kind: input, shape index: {}]   ;;  %s225_s2 = inlined_call_operand.vmem [shape: f32[1,16], index: 2, kind: input, shape index: {}]   ;;  %s226_s3 = inlined_call_operand.hbm [shape: f32[8,16], index: 3, kind: output, shape index: {}]  }
   0x1   :  { %v16_v0 = vld [vmem:[%s224_s1] sm:$0xff]  ;;  %v17_v1 = vld [vmem:[%s224_s1 + $0x8] sm:$0xff]  ;;  %v18_v2 = vld [vmem:[%s224_s1 + $0x10] sm:$0xff]  ;;  %135 = vmatprep.subr.bf16.mxu0 %v169_v3  ;;  %132 = vmatprep.mubr.msk.f32.mxu0 %vm170_vm0, %v171_v6 }
   0x2   :  { %v136_v4 = vpack.c.bf16 %v17_v1, %v16_v0  ;;  %v19_v5 = vld [vmem:[%s224_s1 + $0x18] sm:$0xff] }
   0x3   :  { %8 = vsyncpa [#allocation3], 0  ;;  %v139_v7 = vpack.c.bf16 %v19_v5, %v18_v2  ;;  %v15_v8 = vld [vmem:[%s223_s0] sm:$0xff]  ;;  %vm27_vm1 = vcmask 261120   ;;  %s172_s24 = smov [#allocation2]   ;;  %vm101_vm2 = vcmask 130048  }
   0x4   :  { %137 = vmatpush3.bf16.msra.mxu0 %v136_v4  ;;  %v117_v9 = vld [vmem:[%s225_s2] ss:$0 sm:$0xff]  ;;  %s109_s1 = sshll.u32 %s172_s24, 4  ;;  %s110_s1 = int_to_ptr.vmem [resolvable:$true] %s109_s1 }
   0x5   :  { %138 = vmatprep.subr.bf16.mxu0 %v169_v3  ;;  %s145_s25 = scalar_lea.vmem %s110_s1, 128  ;;  %p150_p1 = scmp.lt.s32.totalorder %s110_s1, %s110_s1 }
   0x6   :  { %p146_p0 = scmp.ne.s32.totalorder %s110_s1, %s145_s25  ;;  %p151_p2 = scmp.lt.s32.totalorder %s145_s25, %s145_s25 }
   0x8   :  { %140 = vmatpush3.bf16.msra.mxu0 %v139_v7  ;;  %p152_p3 = por %p151_p2, %p150_p1 }
   0xa   :  { %p153_p4 = pnand %p152_p3, %p146_p0 }
   0xb   :  { %133 = vmatmul.mubr.msk.f32.vlgmr.msra.gmra.mrb[0].mxu0 %vm27_vm1, %v15_v8 }
  0xde   :  { %v97_v10 = vpop.f32.mrb[0].mxu0 }
  0xdf   :  { %v98_v11 = vadd.f32 %v117_v9, %v97_v10  ;;  %v134_v12 = vpop.f32.mrb[1].mxu0 }
  0xe1   :  { %102 = vst.msk [vmem:[#allocation2] sm:$0xff] %vm101_vm2, %v98_v11 }
  0xe2   :  { %156 = shalt.err (!%p153_p4)
}
  0xe3   :  { %s157_s27 = scalar_lea.hbm %s226_s3, 128 }
  0xe4   :  { %p158_p5 = scmp.ne.s32.totalorder %s226_s3, %s157_s27  ;;  %p161_p6 = scmp.lt.u32.totalorder %s157_s27, %s226_s3 }
  0xe6   :  { %p163_p7 = pnand %p161_p6, %p158_p5 }
  0xe8   :  { %166 = shalt.err (!%p163_p7)
}
  0xe9   :  { %112 = dma.vmem_to_hbm [thread:$0]  %s110_s1, 128, %s226_s3, [#allocation3]  }
  0xea   :  { %167 = dma.done.wait [#allocation3], 128  }
  0xeb   :  { %168 = vsyncadd [#allocation3], 4294967168 }
  0xec   :  { %116 = vsyncpa [#allocation3], 1 }

</bundles_post_ra>
